<compile_context>
chip_gen: v5e
topology: v5e:2x2
jax: 0.10.0
libtpu: 0.0.40
codegen_flags: <defaults>
</compile_context>

<pallas_src>
import functools

import jax
import jax.numpy as jnp
from jax.experimental import pallas as pl
from jax.experimental.pallas import tpu as pltpu

INPUT_SIZE = 30          # Wisconsin breast cancer feature count
NUM_CLASSES = 2
ROW_TILE = 512           # batch tile (lane axis of the transposed layout)


# ---------------------------------------------------------------------------
# Pallas kernel: CTEXT mask -> TSKONE -> linear -> TSKONEout -> log_softmax
# Operates on feature-major blocks: x block is (D, TN), output block (2, TN).
# ---------------------------------------------------------------------------
def seqnet_kernel(x_ref, w_ref, b_ref, o_ref, *, ctext):
    x = x_ref[...]                                   # (D, TN) f32, lane-dense

    # TSKONE: context-dependent device transfer function (inputs in [30, 45]).
    # TODO(synk): exact tsk.TSKONE polynomial coefficients unavailable; using a
    # deterministic piecewise (linear / quadratic) surrogate with the same
    # context-switching semantics.
    y_lo = 0.03 * x - 0.6
    if ctext:
        y_hi = 0.0008 * x * x - 0.016 * x + 0.35
        # CTEXTgen surrogate generated in-kernel: even-indexed features get
        # context 1 when ctext is True (feature index is the sublane axis here).
        # TODO(synk): exact tsk.CTEXTgen semantics unavailable.
        feat = jax.lax.broadcasted_iota(jnp.int32, x.shape, 0)
        h = jnp.where(feat % 2 == 0, y_hi, y_lo)     # (D, TN)
    else:
        h = y_lo

    # F.linear(h, W, b) in transposed form:  z = W @ h + b  -> (2, TN)
    z = jnp.dot(w_ref[...], h, preferred_element_type=jnp.float32)
    z = z + b_ref[...]                               # bias (2, 1) broadcast over lanes

    # TSKONEout: output-stage device nonlinearity.
    # TODO(synk): exact tsk.TSKONEout transfer unavailable; deterministic
    # quadratic surrogate.
    zo = 0.02 * z * z + 0.5 * z                      # (2, TN)

    # 2-class log_softmax (class axis = sublane axis), closed form:
    #   d = zo1 - zo0 ; out0 = -softplus(d) ; out1 = -softplus(-d)
    d = zo[1:2, :] - zo[0:1, :]                      # (1, TN)
    sp_pos = jnp.maximum(d, 0.0) + jnp.log(1.0 + jnp.exp(-jnp.abs(d)))  # softplus(d)
    sp_neg = sp_pos - d                              # softplus(-d)
    o_ref[...] = jnp.concatenate([-sp_pos, -sp_neg], axis=0).astype(o_ref.dtype)


# ---------------------------------------------------------------------------
# Wrapper
# ---------------------------------------------------------------------------
@functools.partial(jax.jit, static_argnames=("ctext", "row_tile"))
def seqnet_ctext_inf(x, l1_w, l1_b, ctext=True, row_tile=ROW_TILE):
    """Forward pass of SeqNetCtextInf.

    x    : (N, INPUT_SIZE) float32, already min-max scaled to [30, 45]
    l1_w : (2, INPUT_SIZE) linear weight (PyTorch convention)
    l1_b : (2,)            linear bias
    returns (N, 2) log-probabilities.
    """
    n, d = x.shape
    assert d == INPUT_SIZE

    # Pad batch to a tile multiple; padded rows are dropped after the kernel.
    n_pad = pl.cdiv(n, row_tile) * row_tile

    # Feature-major (D, N_pad) layout so the kernel's output is lane-dense.
    x_t = jnp.pad(x.astype(jnp.float32).T, ((0, 0), (0, n_pad - n)))

    w = l1_w.astype(jnp.float32)                         # (2, D) as-is
    b = l1_b.reshape(NUM_CLASSES, 1).astype(jnp.float32)  # (2, 1)

    grid = (n_pad // row_tile,)
    out_t = pl.pallas_call(
        functools.partial(seqnet_kernel, ctext=bool(ctext)),
        out_shape=jax.ShapeDtypeStruct((NUM_CLASSES, n_pad), jnp.float32),
        grid_spec=pltpu.PrefetchScalarGridSpec(
            num_scalar_prefetch=0,
            grid=grid,
            in_specs=[
                pl.BlockSpec((d, row_tile), lambda i: (0, i)),        # x (feature-major)
                pl.BlockSpec((NUM_CLASSES, d), lambda i: (0, 0)),     # weight (full)
                pl.BlockSpec((NUM_CLASSES, 1), lambda i: (0, 0)),     # bias (full)
            ],
            out_specs=pl.BlockSpec((NUM_CLASSES, row_tile), lambda i: (0, i)),
        ),
        compiler_params=pltpu.CompilerParams(
            dimension_semantics=("parallel",)),  # batch tiles shard across v7x's 2 TCs
    )(x_t, w, b)

    # Layout plumbing back to the PyTorch (N, 2) convention; drop padded rows.
    return out_t.T[:n]


# ---------------------------------------------------------------------------
# Deterministic setup + smoke test
# ---------------------------------------------------------------------------
def minmax_scale_30_45(x):
    # MinMaxScaler((30, 45)): per-feature scaling into [30, 45]
    lo = jnp.min(x, axis=0, keepdims=True)
    hi = jnp.max(x, axis=0, keepdims=True)
    scale = jnp.where(hi - lo > 0, hi - lo, 1.0)
    return 30.0 + 15.0 * (x - lo) / scale


if __name__ == "__main__":
    key = jax.random.PRNGKey(0)
    k_x, k_w, k_b = jax.random.split(key, 3)

    N = 8  # small batch (wrapper pads to the 512-row tile internally)

    # Raw features -> min-max scale to [30, 45] (as in the reference script).
    x_raw = jax.random.normal(k_x, (N, INPUT_SIZE), dtype=jnp.float32)
    x = minmax_scale_30_45(x_raw)

    # nn.Linear(INPUT_SIZE, 2) default init: U(-1/sqrt(D), 1/sqrt(D))
    bound = 1.0 / jnp.sqrt(jnp.float32(INPUT_SIZE))
    l1_w = jax.random.uniform(k_w, (NUM_CLASSES, INPUT_SIZE),
                              minval=-bound, maxval=bound, dtype=jnp.float32)
    l1_b = jax.random.uniform(k_b, (NUM_CLASSES,),
                              minval=-bound, maxval=bound, dtype=jnp.float32)

    out = seqnet_ctext_inf(x, l1_w, l1_b, ctext=True)
    out = jax.block_until_ready(out)

    assert out.shape == (N, NUM_CLASSES)
    # log_softmax rows must sum (in prob space) to 1
    assert jnp.allclose(jnp.sum(jnp.exp(out), axis=1), 1.0, atol=1e-5)

    # Cross-check against a plain-JAX reference of the same surrogate math.
    feat = jnp.arange(INPUT_SIZE)[None, :]
    h_ref = jnp.where(feat % 2 == 0,
                      0.0008 * x * x - 0.016 * x + 0.35,
                      0.03 * x - 0.6)
    z_ref = h_ref @ l1_w.T + l1_b[None, :]
    zo_ref = 0.02 * z_ref * z_ref + 0.5 * z_ref
    ref = jax.nn.log_softmax(zo_ref, axis=1)
    assert jnp.allclose(out, ref, atol=1e-5, rtol=1e-5)

    print("KERNEL_OK")
</pallas_src>

<mosaic_0001>
module attributes {stable_mosaic.version = 11 : i64} {
  func.func @seqnet_kernel(%arg0: i32, %arg1: memref<30x512xf32, #tpu.memory_space<vmem>>, %arg2: memref<2x30xf32, #tpu.memory_space<vmem>>, %arg3: memref<2x1xf32, #tpu.memory_space<vmem>>, %arg4: memref<2x512xf32, #tpu.memory_space<vmem>>) attributes {dimension_semantics = [#tpu.dimension_semantics<parallel>], iteration_bounds = array<i64: 1>, scalar_prefetch = 0 : i64, scratch_operands = 0 : i64, tpu.core_type = #tpu.core_type<tc>, window_params = [{transform_indices = @transform_0, window_bounds = array<i64: 30, 512>}, {pipeline_mode = #tpu.pipeline_mode<synchronous>, transform_indices = @transform_1, window_bounds = array<i64: 2, 30>}, {pipeline_mode = #tpu.pipeline_mode<synchronous>, transform_indices = @transform_2, window_bounds = array<i64: 2, 1>}, {transform_indices = @transform_3, window_bounds = array<i64: 2, 512>}]} {
    %c0 = arith.constant 0 : index
    %c0_0 = arith.constant 0 : index
    %0 = vector.load %arg1[%c0, %c0_0] : memref<30x512xf32, #tpu.memory_space<vmem>>, vector<30x512xf32>
    %cst = arith.constant 3.000000e-02 : f32
    %1 = vector.broadcast %cst : f32 to vector<30x512xf32>
    %2 = arith.mulf %1, %0 : vector<30x512xf32>
    %cst_1 = arith.constant 6.000000e-01 : f32
    %3 = vector.broadcast %cst_1 : f32 to vector<30x512xf32>
    %4 = arith.subf %2, %3 : vector<30x512xf32>
    %cst_2 = arith.constant 8.000000e-04 : f32
    %5 = vector.broadcast %cst_2 : f32 to vector<30x512xf32>
    %6 = arith.mulf %5, %0 : vector<30x512xf32>
    %7 = arith.mulf %6, %0 : vector<30x512xf32>
    %cst_3 = arith.constant 1.600000e-02 : f32
    %8 = vector.broadcast %cst_3 : f32 to vector<30x512xf32>
    %9 = arith.mulf %8, %0 : vector<30x512xf32>
    %10 = arith.subf %7, %9 : vector<30x512xf32>
    %cst_4 = arith.constant 3.500000e-01 : f32
    %11 = vector.broadcast %cst_4 : f32 to vector<30x512xf32>
    %12 = arith.addf %10, %11 : vector<30x512xf32>
    %13 = tpu.iota {dimensions = array<i32: 0>} : vector<30x512xi32>
    %c2_i32 = arith.constant 2 : i32
    %c0_i32 = arith.constant 0 : i32
    %14 = arith.cmpi eq, %c2_i32, %c0_i32 : i32
    %c1_i32 = arith.constant 1 : i32
    %15 = arith.select %14, %c1_i32, %c2_i32 : i32
    %16 = vector.broadcast %15 : i32 to vector<30x512xi32>
    %17 = arith.remsi %13, %16 : vector<30x512xi32>
    %c0_i32_5 = arith.constant 0 : i32
    %18 = vector.broadcast %c0_i32_5 : i32 to vector<30x512xi32>
    %19 = arith.cmpi ne, %17, %18 : vector<30x512xi32>
    %c0_i32_6 = arith.constant 0 : i32
    %20 = vector.broadcast %c0_i32_6 : i32 to vector<30x512xi32>
    %21 = arith.cmpi slt, %17, %20 : vector<30x512xi32>
    %c0_i32_7 = arith.constant 0 : i32
    %22 = arith.cmpi slt, %15, %c0_i32_7 : i32
    %23 = vector.broadcast %22 : i1 to vector<30x512xi1>
    %24 = vector.broadcast %23 : vector<30x512xi1> to vector<30x512xi1>
    %25 = arith.xori %21, %24 : vector<30x512xi1>
    %26 = arith.andi %25, %19 : vector<30x512xi1>
    %27 = vector.broadcast %15 : i32 to vector<30x512xi32>
    %28 = arith.addi %17, %27 : vector<30x512xi32>
    %29 = arith.select %26, %28, %17 : vector<30x512xi1>, vector<30x512xi32>
    %c0_i32_8 = arith.constant 0 : i32
    %30 = vector.broadcast %c0_i32_8 : i32 to vector<30x512xi32>
    %31 = arith.cmpi eq, %29, %30 : vector<30x512xi32>
    %32 = arith.select %31, %12, %4 : vector<30x512xi1>, vector<30x512xf32>
    %c0_9 = arith.constant 0 : index
    %c0_10 = arith.constant 0 : index
    %33 = vector.load %arg2[%c0_9, %c0_10] : memref<2x30xf32, #tpu.memory_space<vmem>>, vector<2x30xf32>
    %cst_11 = arith.constant dense<0.000000e+00> : vector<2x512xf32>
    %34 = tpu.matmul %33, %32, %cst_11 {dimension_numbers = #tpu.dot_dimension_numbers<[1], [0], [0], [1], [0, 0, 1, 1], [], []>} : vector<2x30xf32>, vector<30x512xf32>, vector<2x512xf32> -> vector<2x512xf32>
    %c0_12 = arith.constant 0 : index
    %c0_13 = arith.constant 0 : index
    %35 = vector.load %arg3[%c0_12, %c0_13] : memref<2x1xf32, #tpu.memory_space<vmem>>, vector<2x1xf32>
    %36 = vector.broadcast %35 : vector<2x1xf32> to vector<2x512xf32>
    %37 = arith.addf %34, %36 : vector<2x512xf32>
    %cst_14 = arith.constant 2.000000e-02 : f32
    %38 = vector.broadcast %cst_14 : f32 to vector<2x512xf32>
    %39 = arith.mulf %38, %37 : vector<2x512xf32>
    %40 = arith.mulf %39, %37 : vector<2x512xf32>
    %cst_15 = arith.constant 5.000000e-01 : f32
    %41 = vector.broadcast %cst_15 : f32 to vector<2x512xf32>
    %42 = arith.mulf %41, %37 : vector<2x512xf32>
    %43 = arith.addf %40, %42 : vector<2x512xf32>
    %44 = vector.extract_strided_slice %43 {offsets = [1, 0], sizes = [1, 512], strides = [1, 1]} : vector<2x512xf32> to vector<1x512xf32>
    %45 = vector.extract_strided_slice %43 {offsets = [0, 0], sizes = [1, 512], strides = [1, 1]} : vector<2x512xf32> to vector<1x512xf32>
    %46 = arith.subf %44, %45 : vector<1x512xf32>
    %cst_16 = arith.constant 0.000000e+00 : f32
    %47 = vector.broadcast %cst_16 : f32 to vector<1x512xf32>
    %48 = arith.maximumf %46, %47 : vector<1x512xf32>
    %49 = math.absf %46 : vector<1x512xf32>
    %cst_17 = arith.constant 0.000000e+00 : f32
    %50 = vector.broadcast %cst_17 : f32 to vector<1x512xf32>
    %51 = arith.subf %50, %49 : vector<1x512xf32>
    %52 = math.exp %51 : vector<1x512xf32>
    %cst_18 = arith.constant 1.000000e+00 : f32
    %53 = vector.broadcast %cst_18 : f32 to vector<1x512xf32>
    %54 = arith.addf %53, %52 : vector<1x512xf32>
    %55 = math.log %54 : vector<1x512xf32>
    %56 = arith.addf %48, %55 : vector<1x512xf32>
    %57 = arith.subf %56, %46 : vector<1x512xf32>
    %cst_19 = arith.constant 0.000000e+00 : f32
    %58 = vector.broadcast %cst_19 : f32 to vector<1x512xf32>
    %59 = arith.subf %58, %56 : vector<1x512xf32>
    %cst_20 = arith.constant 0.000000e+00 : f32
    %60 = vector.broadcast %cst_20 : f32 to vector<1x512xf32>
    %61 = arith.subf %60, %57 : vector<1x512xf32>
    %62 = tpu.concatenate %59, %61 in 0 : vector<1x512xf32>, vector<1x512xf32> -> vector<2x512xf32>
    %c0_21 = arith.constant 0 : index
    %c0_22 = arith.constant 0 : index
    %63 = vector.load %arg4[%c0_21, %c0_22] : memref<2x512xf32, #tpu.memory_space<vmem>>, vector<2x512xf32>
    tpu.vector_store %arg4[%c0_21, %c0_22], %62 {strides = array<i32>} : memref<2x512xf32, #tpu.memory_space<vmem>>, vector<2x512xf32>,
    return
  }
  func.func @transform_0(%arg0: i32) -> (i32, i32) {
    %c0_i32 = arith.constant 0 : i32
    %c0_i32_0 = arith.constant 0 : i32
    return %c0_i32, %arg0 : i32, i32
  }
  func.func @transform_1(%arg0: i32) -> (i32, i32) {
    %c0_i32 = arith.constant 0 : i32
    %c0_i32_0 = arith.constant 0 : i32
    %c0_i32_1 = arith.constant 0 : i32
    return %c0_i32, %c0_i32_0 : i32, i32
  }
  func.func @transform_2(%arg0: i32) -> (i32, i32) {
    %c0_i32 = arith.constant 0 : i32
    %c0_i32_0 = arith.constant 0 : i32
    %c0_i32_1 = arith.constant 0 : i32
    return %c0_i32, %c0_i32_0 : i32, i32
  }
  func.func @transform_3(%arg0: i32) -> (i32, i32) {
    %c0_i32 = arith.constant 0 : i32
    %c0_i32_0 = arith.constant 0 : i32
    return %c0_i32, %arg0 : i32, i32
  }
}

</mosaic_0001>

<bundles_post_ra>
// kernel: seqnet_ctext_inf.1
= control target key start
LH: loop header
LB: loop body
LE: loop exit
PB: predicated region body
PF: predicated region fallthrough
CT: control target
= control target key end

     0   :  { %v142_v0 = vlaneseq  ;;  %vm226_vm0 = vcmask 1045504   ;;  %vm222_vm5 = vcmask 244736   ;;  %vm411_vm6 = vcmask 1040384   ;;  %s626_s0 = inlined_call_operand.vmem [shape: f32[30,512], index: 0, kind: input, shape index: {}]   ;;  %s627_s1 = inlined_call_operand.vmem [shape: f32[2,30], index: 1, kind: input, shape index: {}]   ;;  %s628_s2 = inlined_call_operand.vmem [shape: f32[2,1], index: 2, kind: input, shape index: {}]   ;;  %s629_s3 = inlined_call_operand.vmem [shape: f32[2,512], index: 3, kind: output, shape index: {}]  }
   0x1   :  { %v26_v1 = vld [vmem:[%s626_s0 + $0x60] sm:$0x3f]  ;;  %v27_v2 = vld [vmem:[%s626_s0 + $0x68] sm:$0x3f]  ;;  %v28_v3 = vld [vmem:[%s626_s0 + $0x70] sm:$0x3f] }
   0x2   :  { %v42_v4 = vmul.f32 0.03, %v26_v1  ;;  %v74_v5 = vmul.f32 0.0008, %v26_v1  ;;  %v106_v6 = vmul.f32 0.016, %v26_v1 }
   0x3   :  { %v507_v7 = vshrl.u32 %v142_v0, 7  ;;  %v43_v8 = vmul.f32 0.03, %v27_v2  ;;  %v75_v9 = vmul.f32 0.0008, %v27_v2  ;;  %v22_v26 = vld [vmem:[%s626_s0 + $0x40] sm:$0xff] }
   0x4   :  { %v447_v10 = vadd.f32 -0.6, %v42_v4  ;;  %v90_v11 = vmul.f32 %v74_v5, %v26_v1  ;;  %v107_v12 = vmul.f32 0.016, %v27_v2  ;;  %v44_v13 = vmul.f32 0.03, %v28_v3 }
   0x5   :  { %v146_v14 = vadd.s32 24, %v507_v7  ;;  %v448_v15 = vadd.f32 -0.6, %v43_v8  ;;  %v91_v16 = vmul.f32 %v75_v9, %v27_v2  ;;  %v76_v17 = vmul.f32 0.0008, %v28_v3  ;;  %v23_v38 = vld [vmem:[%s626_s0 + $0x48] sm:$0xff] }
   0x6   :  { %v122_v18 = vsub.f32 %v90_v11, %v106_v6  ;;  %v449_v19 = vadd.f32 -0.6, %v44_v13  ;;  %v108_v20 = vmul.f32 0.016, %v28_v3  ;;  %v29_v21 = vld [vmem:[%s626_s0 + $0x78] sm:$0x3f] }
   0x7   :  { %v172_v22 = vand.u32 1, %v146_v14  ;;  %v123_v23 = vsub.f32 %v91_v16, %v107_v12  ;;  %v92_v24 = vmul.f32 %v76_v17, %v28_v3  ;;  %v45_v25 = vmul.f32 0.03, %v29_v21  ;;  %v24_v47 = vld [vmem:[%s626_s0 + $0x50] sm:$0xff]  ;;  %v25_v52 = vld [vmem:[%s626_s0 + $0x58] sm:$0xff]  ;;  %v18_v61 = vld [vmem:[%s626_s0 + $0x20] sm:$0xff] }
   0x8   :  { %v138_v27 = vadd.f32 0.35, %v122_v18  ;;  %v77_v28 = vmul.f32 0.0008, %v29_v21  ;;  %v109_v29 = vmul.f32 0.016, %v29_v21 }
   0x9   :  { %vm516_vm1 = vcmp.eq.s32.totalorder %v172_v22, 0  ;;  %v139_v31 = vadd.f32 0.35, %v123_v23  ;;  %v124_v32 = vsub.f32 %v92_v24, %v108_v20  ;;  %v450_v33 = vadd.f32 -0.6, %v45_v25  ;;  %v19_v6 = vld [vmem:[%s626_s0 + $0x28] sm:$0xff] }
   0xa   :  { %v211_v34 = vsel %vm516_vm1, %v138_v27, %v447_v10  ;;  %v93_v35 = vmul.f32 %v77_v28, %v29_v21  ;;  %v38_v36 = vmul.f32 0.03, %v22_v26  ;;  %v70_v37 = vmul.f32 0.0008, %v22_v26  ;;  %v20_v24 = vld [vmem:[%s626_s0 + $0x30] sm:$0xff] }
   0xb   :  { %451 = vmatpush.msk.msra.mxu0 %vm226_vm0, %v211_v34  ;;  %v212_v39 = vsel %vm516_vm1, %v139_v31, %v448_v15  ;;  %v140_v40 = vadd.f32 0.35, %v124_v32  ;;  %v102_v41 = vmul.f32 0.016, %v22_v26  ;;  %v145_v42 = vadd.s32 16, %v507_v7 }
   0xc   :  { %453 = vmatpush.msk.msra.mxu1 %vm226_vm0, %v212_v39  ;;  %v125_v43 = vsub.f32 %v93_v35, %v109_v29  ;;  %v443_v44 = vadd.f32 -0.6, %v38_v36  ;;  %v86_v45 = vmul.f32 %v70_v37, %v22_v26  ;;  %v39_v46 = vmul.f32 0.03, %v23_v38 }
   0xd   :  { %v213_v48 = vsel %vm516_vm1, %v140_v40, %v449_v19  ;;  %v165_v49 = vand.u32 1, %v145_v42  ;;  %v71_v50 = vmul.f32 0.0008, %v23_v38  ;;  %v103_v51 = vmul.f32 0.016, %v23_v38  ;;  %v14_v40 = vld [vmem:[%s626_s0] sm:$0xff] }
   0xe   :  { %455 = vmatpush.msk.msra.mxu2 %vm226_vm0, %v213_v48  ;;  %v141_v53 = vadd.f32 0.35, %v125_v43  ;;  %v118_v54 = vsub.f32 %v86_v45, %v102_v41  ;;  %v444_v55 = vadd.f32 -0.6, %v39_v46  ;;  %v40_v56 = vmul.f32 0.03, %v24_v47 }
   0xf   :  { %vm539_vm2 = vcmp.eq.s32.totalorder %v165_v49, 0  ;;  %v87_v58 = vmul.f32 %v71_v50, %v23_v38  ;;  %v72_v59 = vmul.f32 0.0008, %v24_v47  ;;  %v104_v60 = vmul.f32 0.016, %v24_v47 }
  0x10   :  { %v214_v62 = vsel %vm516_vm1, %v141_v53, %v450_v33  ;;  %v134_v63 = vadd.f32 0.35, %v118_v54  ;;  %v445_v0 = vadd.f32 -0.6, %v40_v56  ;;  %v41_v1 = vmul.f32 0.03, %v25_v52 }
  0x11   :  { %457 = vmatpush.msk.msra.mxu3 %vm226_vm0, %v214_v62  ;;  %v119_v2 = vsub.f32 %v87_v58, %v103_v51  ;;  %v88_v3 = vmul.f32 %v72_v59, %v24_v47  ;;  %v73_v4 = vmul.f32 0.0008, %v25_v52  ;;  %v105_v5 = vmul.f32 0.016, %v25_v52  ;;  %v21_v33 = vld [vmem:[%s626_s0 + $0x38] sm:$0xff]  ;;  %v15_v53 = vld [vmem:[%s626_s0 + $0x8] sm:$0xff] }
  0x12   :  { %v207_v8 = vsel %vm539_vm2, %v134_v63, %v443_v44  ;;  %v446_v9 = vadd.f32 -0.6, %v41_v1  ;;  %v34_v10 = vmul.f32 0.03, %v18_v61  ;;  %v66_v11 = vmul.f32 0.0008, %v18_v61 }
  0x13   :  { %252 = vmatpush.msra.mxu0 %v207_v8  ;;  %v135_v12 = vadd.f32 0.35, %v119_v2  ;;  %v120_v13 = vsub.f32 %v88_v3, %v104_v60  ;;  %v89_v14 = vmul.f32 %v73_v4, %v25_v52  ;;  %v98_v15 = vmul.f32 0.016, %v18_v61  ;;  %v17_v1 = vld [vmem:[%s626_s0 + $0x18] sm:$0xff] }
  0x14   :  { %v439_v16 = vadd.f32 -0.6, %v34_v10  ;;  %v82_v17 = vmul.f32 %v66_v11, %v18_v61  ;;  %v144_v18 = vadd.s32 8, %v507_v7  ;;  %v35_v19 = vmul.f32 0.03, %v19_v6  ;;  %v16_v61 = vld [vmem:[%s626_s0 + $0x10] sm:$0xff] }
  0x15   :  { %v208_v20 = vsel %vm539_vm2, %v135_v12, %v444_v55  ;;  %v136_v21 = vadd.f32 0.35, %v120_v13  ;;  %v121_v22 = vsub.f32 %v89_v14, %v105_v5  ;;  %v67_v23 = vmul.f32 0.0008, %v19_v6  ;;  %v215_v11 = vld [vmem:[%s627_s1] sm:$0x3] }
  0x16   :  { %272 = vmatpush.msra.mxu1 %v208_v20  ;;  %v114_v25 = vsub.f32 %v82_v17, %v98_v15  ;;  %v158_v26 = vand.u32 1, %v144_v18  ;;  %v440_v27 = vadd.f32 -0.6, %v35_v19  ;;  %v99_v28 = vmul.f32 0.016, %v19_v6 }
  0x17   :  { %v209_v29 = vsel %vm539_vm2, %v136_v21, %v445_v0  ;;  %v137_v30 = vadd.f32 0.35, %v121_v22  ;;  %v83_v31 = vmul.f32 %v67_v23, %v19_v6  ;;  %v36_v32 = vmul.f32 0.03, %v20_v24  ;;  %v216_v19 = vld [vmem:[%s628_s2] sm:$0x3] }
  0x18   :  { %292 = vmatpush.msra.mxu2 %v209_v29  ;;  %v130_v34 = vadd.f32 0.35, %v114_v25  ;;  %vm565_vm3 = vcmp.eq.s32.totalorder %v158_v26, 0  ;;  %v68_v36 = vmul.f32 0.0008, %v20_v24  ;;  %v151_v41 = vand.u32 1, %v507_v7 }
  0x19   :  { %v210_v37 = vsel %vm539_vm2, %v137_v30, %v446_v9  ;;  %v115_v38 = vsub.f32 %v83_v31, %v99_v28  ;;  %v100_v39 = vmul.f32 0.016, %v20_v24  ;;  %v37_v44 = vmul.f32 0.03, %v21_v33 }
  0x1a   :  { %312 = vmatpush.msra.mxu3 %v210_v37  ;;  %v203_v42 = vsel %vm565_vm3, %v130_v34, %v439_v16  ;;  %v84_v43 = vmul.f32 %v68_v36, %v20_v24  ;;  %v69_v45 = vmul.f32 0.0008, %v21_v33  ;;  %v101_v47 = vmul.f32 0.016, %v21_v33 }
  0x1b   :  { %253 = vmatpush.msra.mxu0 %v203_v42  ;;  %v131_v46 = vadd.f32 0.35, %v115_v38  ;;  %v30_v48 = vmul.f32 0.03, %v14_v40  ;;  %v441_v49 = vadd.f32 -0.6, %v36_v32 }
  0x1c   :  { %v116_v50 = vsub.f32 %v84_v43, %v100_v39  ;;  %v85_v51 = vmul.f32 %v69_v45, %v21_v33  ;;  %v62_v52 = vmul.f32 0.0008, %v14_v40  ;;  %v442_v54 = vadd.f32 -0.6, %v37_v44 }
  0x1d   :  { %v204_v7 = vsel %vm565_vm3, %v131_v46, %v440_v27  ;;  %v435_v55 = vadd.f32 -0.6, %v30_v48  ;;  %v94_v56 = vmul.f32 0.016, %v14_v40  ;;  %v31_v60 = vmul.f32 0.03, %v15_v53 }
  0x1e   :  { %273 = vmatpush.msra.mxu1 %v204_v7  ;;  %v132_v57 = vadd.f32 0.35, %v116_v50  ;;  %v117_v58 = vsub.f32 %v85_v51, %v101_v47  ;;  %v78_v59 = vmul.f32 %v62_v52, %v14_v40  ;;  %vm585_vm4 = vcmp.eq.s32.totalorder %v151_v41, 0 }
  0x1f   :  { %v63_v63 = vmul.f32 0.0008, %v15_v53  ;;  %v95_v0 = vmul.f32 0.016, %v15_v53  ;;  %v32_v5 = vmul.f32 0.03, %v16_v61 }
  0x20   :  { %v205_v2 = vsel %vm565_vm3, %v132_v57, %v441_v49  ;;  %v133_v3 = vadd.f32 0.35, %v117_v58  ;;  %v110_v4 = vsub.f32 %v78_v59, %v94_v56  ;;  %v436_v6 = vadd.f32 -0.6, %v31_v60 }
  0x21   :  { %293 = vmatpush.msra.mxu2 %v205_v2  ;;  %v79_v8 = vmul.f32 %v63_v63, %v15_v53  ;;  %v64_v9 = vmul.f32 0.0008, %v16_v61  ;;  %v96_v10 = vmul.f32 0.016, %v16_v61  ;;  %v33_v14 = vmul.f32 0.03, %v17_v1 }
  0x22   :  { %v206_v12 = vsel %vm565_vm3, %v133_v3, %v442_v54  ;;  %v126_v13 = vadd.f32 0.35, %v110_v4  ;;  %v65_v15 = vmul.f32 0.0008, %v17_v1  ;;  %v97_v18 = vmul.f32 0.016, %v17_v1 }
  0x23   :  { %313 = vmatpush.msra.mxu3 %v206_v12  ;;  %v111_v16 = vsub.f32 %v79_v8, %v95_v0  ;;  %v80_v17 = vmul.f32 %v64_v9, %v16_v61  ;;  %v437_v23 = vadd.f32 -0.6, %v32_v5  ;;  %v477_v25 = vmov 0  }
  0x24   :  { %v199_v20 = vsel %vm585_vm4, %v126_v13, %v435_v55  ;;  %v81_v21 = vmul.f32 %v65_v15, %v17_v1  ;;  %460 = vset.pattern.permute.xlu0 %v477_v25  ;;  %v438_v26 = vadd.f32 -0.6, %v33_v14  ;;  %vm423_vm7 = vcmask 1041408  }
  0x25   :  { %254 = vmatpush.msra.mxu0 %v199_v20  ;;  %v127_v22 = vadd.f32 0.35, %v111_v16  ;;  %v112_v24 = vsub.f32 %v80_v17, %v96_v10  ;;  %219 = vperm.xlu0 %460, %v216_v19   ;;  %vm425_vm8 = vcmask 1045508   ;;  %vm427_vm9 = vcmask 1043456  }
  0x26   :  { %v113_v27 = vsub.f32 %v81_v21, %v97_v18  ;;  %452 = vmatmul.msk.f32.vlgmr.msra.gmra.mxu0 %vm222_vm5, %v215_v11 }
  0x27   :  { %v200_v28 = vsel %vm585_vm4, %v127_v22, %v436_v6  ;;  %v128_v29 = vadd.f32 0.35, %v112_v24 }
  0x28   :  { %274 = vmatpush.msra.mxu1 %v200_v28  ;;  %v129_v30 = vadd.f32 0.35, %v113_v27 }
  0x29   :  { %v201_v31 = vsel %vm585_vm4, %v128_v29, %v437_v23  ;;  %454 = vmatmul.msk.f32.vlgmr.msra.gmra.mxu1 %vm222_vm5, %v215_v11 }
  0x2a   :  { %294 = vmatpush.msra.mxu2 %v201_v31  ;;  %v202_v32 = vsel %vm585_vm4, %v129_v30, %v438_v26 }
  0x2b   :  { %314 = vmatpush.msra.mxu3 %v202_v32  ;;  %456 = vmatmul.msk.f32.vlgmr.msra.gmra.mxu2 %vm222_vm5, %v215_v11 }
  0x2c   :  { %458 = vmatmul.msk.f32.vlgmr.msra.gmra.mxu3 %vm222_vm5, %v215_v11 }
  0x97   :  { %v220_v33 = vpop.permute.xlu0 %219 }
  0xa3   :  { %v256_v34 = vpop.f32.mrf.mxu0 }
  0xa4   :  { %v257_v35 = vadd.f32 %v256_v34, %v220_v33 }
  0xa6   :  { %v319_v36 = vmul.f32 0.02, %v257_v35  ;;  %v327_v37 = vmul.f32 0.5, %v257_v35  ;;  %v276_v38 = vpop.f32.mrf.mxu1 }
  0xa7   :  { %v277_v39 = vadd.f32 %v276_v38, %v220_v33 }
  0xa8   :  { %v323_v40 = vmul.f32 %v319_v36, %v257_v35 }
  0xa9   :  { %v320_v41 = vmul.f32 0.02, %v277_v39  ;;  %v328_v42 = vmul.f32 0.5, %v277_v39 }
  0xaa   :  { %v331_v43 = vadd.f32 %v327_v37, %v323_v40 }
  0xab   :  { %v324_v44 = vmul.f32 %v320_v41, %v277_v39 }
  0xac   :  { %v339_v45 = vrot.slane %v331_v43, 7 }
  0xad   :  { %v332_v46 = vadd.f32 %v328_v42, %v324_v44 }
  0xae   :  { %v614_v47 = vsub.f32 %v331_v43, %v339_v45  ;;  %v296_v48 = vpop.f32.mrf.mxu2 }
  0xaf   :  { %v340_v49 = vrot.slane %v332_v46, 7  ;;  %v297_v50 = vadd.f32 %v296_v48, %v220_v33  ;;  %v316_v51 = vpop.f32.mrf.mxu3 }
  0xb0   :  { %v355_v52 = vand.u32 2147483647, %v614_v47  ;;  %v317_v53 = vadd.f32 %v316_v51, %v220_v33  ;;  %v351_v28 = vmax.f32 %v614_v47, 0.0 }
  0xb1   :  { %v348_v7 = vsub.f32 %v332_v46, %v340_v49  ;;  %v321_v54 = vmul.f32 0.02, %v297_v50  ;;  %v329_v59 = vmul.f32 0.5, %v297_v50 }
  0xb2   :  { %v359_v55 = vsub.f32 0.0, %v355_v52  ;;  %v322_v56 = vmul.f32 0.02, %v317_v53  ;;  %v330_v62 = vmul.f32 0.5, %v317_v53 }
  0xb3   :  { %v356_v57 = vand.u32 2147483647, %v348_v7  ;;  %v325_v58 = vmul.f32 %v321_v54, %v297_v50  ;;  %v352_v23 = vmax.f32 %v348_v7, 0.0 }
  0xb4   :  { %v363_v60 = vmul.f32 1.442695, %v359_v55  ;;  %v326_v61 = vmul.f32 %v322_v56, %v317_v53 }
  0xb5   :  { %v360_v63 = vsub.f32 0.0, %v356_v57  ;;  %v333_v0 = vadd.f32 %v329_v59, %v325_v58 }
  0xb6   :  { %461 = vpow2.f32 %v363_v60  ;;  %v334_v1 = vadd.f32 %v330_v62, %v326_v61 }
  0xb7   :  { %v365_v2 = vmul.f32 1.442695, %v360_v63  ;;  %v341_v3 = vrot.slane %v333_v0, 7 }
  0xb8   :  { %v342_v4 = vrot.slane %v334_v1, 7 }
  0xb9   :  { %463 = vpow2.f32 %v365_v2  ;;  %v349_v5 = vsub.f32 %v333_v0, %v341_v3 }
  0xba   :  { %v350_v6 = vsub.f32 %v334_v1, %v342_v4 }
  0xbb   :  { %v357_v8 = vand.u32 2147483647, %v349_v5  ;;  %v353_v33 = vmax.f32 %v349_v5, 0.0 }
  0xbc   :  { %v462_v9 = vpop.eup %461  ;;  %v358_v10 = vand.u32 2147483647, %v350_v6  ;;  %v354_v39 = vmax.f32 %v350_v6, 0.0 }
  0xbd   :  { %v371_v11 = vadd.f32 1.0, %v462_v9  ;;  %v361_v12 = vsub.f32 0.0, %v357_v8 }
  0xbe   :  { %v362_v13 = vsub.f32 0.0, %v358_v10 }
  0xbf   :  { %v464_v14 = vpop.eup %463  ;;  %v367_v15 = vmul.f32 1.442695, %v361_v12  ;;  %465 = vlog2.f32 %v371_v11 }
  0xc0   :  { %v372_v16 = vadd.f32 1.0, %v464_v14  ;;  %v369_v17 = vmul.f32 1.442695, %v362_v13 }
  0xc1   :  { %467 = vpow2.f32 %v367_v15 }
  0xc2   :  { %469 = vlog2.f32 %v372_v16 }
  0xc3   :  { %471 = vpow2.f32 %v369_v17 }
  0xc5   :  { %v466_v18 = vpop.eup %465 }
  0xc6   :  { %v376_v27 = vmul.f32 0.6931472, %v466_v18 }
  0xc7   :  { %v468_v19 = vpop.eup %467 }
  0xc8   :  { %v470_v20 = vpop.eup %469  ;;  %v373_v21 = vadd.f32 1.0, %v468_v19  ;;  %v383_v32 = vadd.f32 %v376_v27, %v351_v28 }
  0xc9   :  { %v472_v22 = vpop.eup %471  ;;  %v378_v24 = vmul.f32 0.6931472, %v470_v20 }
  0xca   :  { %473 = vlog2.f32 %v373_v21  ;;  %v374_v25 = vadd.f32 1.0, %v472_v22  ;;  %v387_v41 = vsub.f32 %v383_v32, %v614_v47  ;;  %v391_v42 = vsub.f32 0.0, %v383_v32 }
  0xcb   :  { %v384_v26 = vadd.f32 %v378_v24, %v352_v23 }
  0xcc   :  { %475 = vlog2.f32 %v374_v25  ;;  %v395_v52 = vsub.f32 0.0, %v387_v41  ;;  %v403_v53 = vrot.slane %v391_v42, 1 }
  0xcd   :  { %v388_v29 = vsub.f32 %v384_v26, %v348_v7  ;;  %v392_v30 = vsub.f32 0.0, %v384_v26 }
  0xce   :  { %v412_v59 = vsel %vm411_vm6, %v403_v53, %v395_v52 }
  0xcf   :  { %v396_v36 = vsub.f32 0.0, %v388_v29  ;;  %v404_v37 = vrot.slane %v392_v30, 1 }
  0xd0   :  { %v474_v31 = vpop.eup %473 }
  0xd1   :  { %v380_v34 = vmul.f32 0.6931472, %v474_v31  ;;  %v413_v46 = vsel %vm411_vm6, %v404_v37, %v396_v36 }
  0xd2   :  { %v476_v35 = vpop.eup %475  ;;  %v420_v56 = vrot.slane %v413_v46, 6 }
  0xd3   :  { %v385_v38 = vadd.f32 %v380_v34, %v353_v33  ;;  %v382_v40 = vmul.f32 0.6931472, %v476_v35 }
  0xd4   :  { %v424_v60 = vsel %vm423_vm7, %v412_v59, %v420_v56 }
  0xd5   :  { %v389_v43 = vsub.f32 %v385_v38, %v349_v5  ;;  %v393_v44 = vsub.f32 0.0, %v385_v38  ;;  %v386_v45 = vadd.f32 %v382_v40, %v354_v39 }
  0xd7   :  { %v397_v48 = vsub.f32 0.0, %v389_v43  ;;  %v405_v49 = vrot.slane %v393_v44, 1  ;;  %v390_v50 = vsub.f32 %v386_v45, %v350_v6  ;;  %v394_v51 = vsub.f32 0.0, %v386_v45 }
  0xd9   :  { %v414_v7 = vsel %vm411_vm6, %v405_v49, %v397_v48  ;;  %v398_v54 = vsub.f32 0.0, %v390_v50  ;;  %v406_v55 = vrot.slane %v394_v51, 1 }
  0xda   :  { %v421_v57 = vrot.slane %v414_v7, 4 }
  0xdb   :  { %v415_v47 = vsel %vm411_vm6, %v406_v55, %v398_v54 }
  0xdc   :  { %v422_v58 = vrot.slane %v415_v47, 2 }
  0xde   :  { %v426_v61 = vsel %vm425_vm8, %v421_v57, %v422_v58 }
  0xdf   :  { %v428_v62 = vsel %vm427_vm9, %v424_v60, %v426_v61 }
  0xe0   :  { %430 = vst [vmem:[%s629_s3] sm:$0xff] %v428_v62 }

</bundles_post_ra>
